<compile_context>
chip_gen: v7x
topology: tpu7x:2x2x1
jax: 0.10.0
libtpu: 0.0.40
codegen_flags: <defaults>
</compile_context>

<pallas_src>
import jax
import jax.numpy as jnp
from jax.experimental import pallas as pl
from jax.experimental.pallas import tpu as pltpu


def _clifford_kernel(g_ref, a_ref, o_ref):
    # g_ref, a_ref, o_ref: (4, TS, 128) tiles; leading index = quaternion component.
    # Per-component slices are dense (TS, 128) slabs -> full vreg sublane occupancy.
    # Arithmetic is done in f32 (no-op for f32 inputs; correct/safe for bf16 inputs,
    # including v5e which has no bf16 VALU), cast back on store.
    g0 = g_ref[0].astype(jnp.float32)
    g1 = g_ref[1].astype(jnp.float32)
    g2 = g_ref[2].astype(jnp.float32)
    g3 = g_ref[3].astype(jnp.float32)
    q0 = a_ref[0].astype(jnp.float32)
    q1 = a_ref[1].astype(jnp.float32)
    q2 = a_ref[2].astype(jnp.float32)
    q3 = a_ref[3].astype(jnp.float32)

    dt = o_ref.dtype
    # Direct per-component stores (no concatenate -> no (4, TS, 128) temporary,
    # no extra vreg copies / sublane packing before the vst).
    o_ref[0] = (g0 * q0 - g1 * q1 - g2 * q2 - g3 * q3).astype(dt)
    o_ref[1] = (g0 * q1 + g1 * q0 + g2 * q3 - g3 * q2).astype(dt)
    o_ref[2] = (g0 * q2 - g1 * q3 + g2 * q0 + g3 * q1).astype(dt)
    o_ref[3] = (g0 * q3 + g1 * q2 - g2 * q1 + g3 * q0).astype(dt)


def clifford_backprop(grad, activation, *, ts=1024):
    """Pallas implementation of CliffordBackprop.forward(grad, activation).

    grad, activation: arrays of identical shape (..., 4).
    Returns an array of the same shape and dtype as `grad`.

    `ts` = number of 128-wide rows per block. Block bytes = 4 * ts * 128 * itemsize;
    the default ts=1024 gives 2 MiB f32 blocks -> 3 arrays x 2 pipeline buffers
    = 12 MiB VMEM, which fits the default scoped-VMEM budget on v5e/v6e/v7x while
    amortizing per-grid-step overhead to ~1%.
    """
    assert grad.shape == activation.shape
    assert grad.shape[-1] == 4

    orig_shape = grad.shape
    dtype = grad.dtype

    m = 1
    for d in orig_shape[:-1]:
        m *= d

    # Component-major layout: (M, 4) -> (4, M). One unavoidable HBM pass given the
    # (..., 4) interface of the module.
    # TODO(synk): if the surrounding model keeps grads/activations component-major
    # upstream, these transposes (and the final one) disappear entirely.
    g2d = jnp.transpose(grad.reshape(m, 4))        # (4, M)
    a2d = jnp.transpose(activation.reshape(m, 4))  # (4, M)

    # Pad M only up to a multiple of 128 (needed for the free (4, Mr, 128) reshape).
    # XLA fuses this pad into the transpose copy, so it adds no extra HBM pass.
    # No padding to a tile multiple is done: Pallas masks the partial last block.
    m_pad = pl.cdiv(m, 128) * 128
    if m_pad != m:
        g2d = jnp.pad(g2d, ((0, 0), (0, m_pad - m)))
        a2d = jnp.pad(a2d, ((0, 0), (0, m_pad - m)))

    m_rows = m_pad // 128
    g3d = g2d.reshape(4, m_rows, 128)   # free reshape -> lane-dense layout
    a3d = a2d.reshape(4, m_rows, 128)

    # Clamp the block height for small inputs (a full-extent block dim is legal
    # even when not a multiple of 8); for large inputs ts stays a multiple of 8.
    ts_eff = min(ts, m_rows)
    grid = (pl.cdiv(m_rows, ts_eff),)

    out = pl.pallas_call(
        _clifford_kernel,
        out_shape=jax.ShapeDtypeStruct((4, m_rows, 128), dtype),
        grid_spec=pltpu.PrefetchScalarGridSpec(
            num_scalar_prefetch=0,
            grid=grid,
            in_specs=[
                pl.BlockSpec((4, ts_eff, 128), lambda i: (0, i, 0)),
                pl.BlockSpec((4, ts_eff, 128), lambda i: (0, i, 0)),
            ],
            out_specs=pl.BlockSpec((4, ts_eff, 128), lambda i: (0, i, 0)),
        ),
        compiler_params=pltpu.CompilerParams(
            dimension_semantics=("parallel",),  # shards the 1-D grid across TCs (v7x)
        ),
    )(g3d, a3d)

    out = out.reshape(4, m_pad)[:, :m]             # strip the 128-alignment pad
    return jnp.transpose(out).reshape(orig_shape)  # back to (..., 4)


def _reference(grad, activation):
    """Pure-JAX reference matching the PyTorch forward exactly."""
    q0, q1, q2, q3 = (activation[..., 0], activation[..., 1],
                      activation[..., 2], activation[..., 3])
    g0, g1, g2, g3 = (grad[..., 0], grad[..., 1], grad[..., 2], grad[..., 3])
    r0 = g0 * q0 - g1 * q1 - g2 * q2 - g3 * q3
    r1 = g0 * q1 + g1 * q0 + g2 * q3 - g3 * q2
    r2 = g0 * q2 - g1 * q3 + g2 * q0 + g3 * q1
    r3 = g0 * q3 + g1 * q2 - g2 * q1 + g3 * q0
    return jnp.stack([r0, r1, r2, r3], axis=-1)


if __name__ == "__main__":
    # CliffordBackprop has no parameters; just build deterministic inputs.
    key = jax.random.PRNGKey(0)
    k_g, k_a = jax.random.split(key)

    # (batch=2, seq=8, hidden=32, quaternion=4) -> M = 512 flattened quaternions.
    shape = (2, 8, 32, 4)
    grad = jax.random.normal(k_g, shape, dtype=jnp.float32)
    activation = jax.random.normal(k_a, shape, dtype=jnp.float32)

    out = clifford_backprop(grad, activation)
    out = jax.block_until_ready(out)

    ref = _reference(grad, activation)
    assert out.shape == shape, (out.shape, shape)
    assert jnp.allclose(out, ref, atol=1e-5, rtol=1e-5), "mismatch vs reference"

    print("KERNEL_OK")
</pallas_src>

<mosaic_0001>
module attributes {stable_mosaic.version = 11 : i64} {
  func.func @_clifford_kernel(%arg0: i32, %arg1: memref<4x4x128xf32, #tpu.memory_space<vmem>>, %arg2: memref<4x4x128xf32, #tpu.memory_space<vmem>>, %arg3: memref<4x4x128xf32, #tpu.memory_space<vmem>>) attributes {dimension_semantics = [#tpu.dimension_semantics<parallel>], iteration_bounds = array<i64: 1>, scalar_prefetch = 0 : i64, scratch_operands = 0 : i64, tpu.core_type = #tpu.core_type<tc>, window_params = [{transform_indices = @transform_0, window_bounds = array<i64: 4, 4, 128>}, {transform_indices = @transform_1, window_bounds = array<i64: 4, 4, 128>}, {transform_indices = @transform_2, window_bounds = array<i64: 4, 4, 128>}]} {
    %c0 = arith.constant 0 : index
    %c0_0 = arith.constant 0 : index
    %c0_1 = arith.constant 0 : index
    %0 = vector.load %arg1[%c0, %c0_0, %c0_1] : memref<4x4x128xf32, #tpu.memory_space<vmem>>, vector<1x4x128xf32>
    %1 = vector.shape_cast %0 : vector<1x4x128xf32> to vector<4x128xf32>
    %c1 = arith.constant 1 : index
    %c0_2 = arith.constant 0 : index
    %c0_3 = arith.constant 0 : index
    %2 = vector.load %arg1[%c1, %c0_2, %c0_3] : memref<4x4x128xf32, #tpu.memory_space<vmem>>, vector<1x4x128xf32>
    %3 = vector.shape_cast %2 : vector<1x4x128xf32> to vector<4x128xf32>
    %c2 = arith.constant 2 : index
    %c0_4 = arith.constant 0 : index
    %c0_5 = arith.constant 0 : index
    %4 = vector.load %arg1[%c2, %c0_4, %c0_5] : memref<4x4x128xf32, #tpu.memory_space<vmem>>, vector<1x4x128xf32>
    %5 = vector.shape_cast %4 : vector<1x4x128xf32> to vector<4x128xf32>
    %c3 = arith.constant 3 : index
    %c0_6 = arith.constant 0 : index
    %c0_7 = arith.constant 0 : index
    %6 = vector.load %arg1[%c3, %c0_6, %c0_7] : memref<4x4x128xf32, #tpu.memory_space<vmem>>, vector<1x4x128xf32>
    %7 = vector.shape_cast %6 : vector<1x4x128xf32> to vector<4x128xf32>
    %c0_8 = arith.constant 0 : index
    %c0_9 = arith.constant 0 : index
    %c0_10 = arith.constant 0 : index
    %8 = vector.load %arg2[%c0_8, %c0_9, %c0_10] : memref<4x4x128xf32, #tpu.memory_space<vmem>>, vector<1x4x128xf32>
    %9 = vector.shape_cast %8 : vector<1x4x128xf32> to vector<4x128xf32>
    %c1_11 = arith.constant 1 : index
    %c0_12 = arith.constant 0 : index
    %c0_13 = arith.constant 0 : index
    %10 = vector.load %arg2[%c1_11, %c0_12, %c0_13] : memref<4x4x128xf32, #tpu.memory_space<vmem>>, vector<1x4x128xf32>
    %11 = vector.shape_cast %10 : vector<1x4x128xf32> to vector<4x128xf32>
    %c2_14 = arith.constant 2 : index
    %c0_15 = arith.constant 0 : index
    %c0_16 = arith.constant 0 : index
    %12 = vector.load %arg2[%c2_14, %c0_15, %c0_16] : memref<4x4x128xf32, #tpu.memory_space<vmem>>, vector<1x4x128xf32>
    %13 = vector.shape_cast %12 : vector<1x4x128xf32> to vector<4x128xf32>
    %c3_17 = arith.constant 3 : index
    %c0_18 = arith.constant 0 : index
    %c0_19 = arith.constant 0 : index
    %14 = vector.load %arg2[%c3_17, %c0_18, %c0_19] : memref<4x4x128xf32, #tpu.memory_space<vmem>>, vector<1x4x128xf32>
    %15 = vector.shape_cast %14 : vector<1x4x128xf32> to vector<4x128xf32>
    %16 = arith.mulf %1, %9 : vector<4x128xf32>
    %17 = arith.mulf %3, %11 : vector<4x128xf32>
    %18 = arith.subf %16, %17 : vector<4x128xf32>
    %19 = arith.mulf %5, %13 : vector<4x128xf32>
    %20 = arith.subf %18, %19 : vector<4x128xf32>
    %21 = arith.mulf %7, %15 : vector<4x128xf32>
    %22 = arith.subf %20, %21 : vector<4x128xf32>
    %c0_20 = arith.constant 0 : index
    %c0_21 = arith.constant 0 : index
    %c0_22 = arith.constant 0 : index
    %23 = vector.load %arg3[%c0_20, %c0_21, %c0_22] : memref<4x4x128xf32, #tpu.memory_space<vmem>>, vector<1x4x128xf32>
    %24 = vector.shape_cast %23 : vector<1x4x128xf32> to vector<4x128xf32>
    %25 = vector.shape_cast %22 : vector<4x128xf32> to vector<1x4x128xf32>
    tpu.vector_store %arg3[%c0_20, %c0_21, %c0_22], %25 {strides = array<i32>} : memref<4x4x128xf32, #tpu.memory_space<vmem>>, vector<1x4x128xf32>,
    %26 = arith.mulf %1, %11 : vector<4x128xf32>
    %27 = arith.mulf %3, %9 : vector<4x128xf32>
    %28 = arith.addf %26, %27 : vector<4x128xf32>
    %29 = arith.mulf %5, %15 : vector<4x128xf32>
    %30 = arith.addf %28, %29 : vector<4x128xf32>
    %31 = arith.mulf %7, %13 : vector<4x128xf32>
    %32 = arith.subf %30, %31 : vector<4x128xf32>
    %c1_23 = arith.constant 1 : index
    %c0_24 = arith.constant 0 : index
    %c0_25 = arith.constant 0 : index
    %33 = vector.load %arg3[%c1_23, %c0_24, %c0_25] : memref<4x4x128xf32, #tpu.memory_space<vmem>>, vector<1x4x128xf32>
    %34 = vector.shape_cast %33 : vector<1x4x128xf32> to vector<4x128xf32>
    %35 = vector.shape_cast %32 : vector<4x128xf32> to vector<1x4x128xf32>
    tpu.vector_store %arg3[%c1_23, %c0_24, %c0_25], %35 {strides = array<i32>} : memref<4x4x128xf32, #tpu.memory_space<vmem>>, vector<1x4x128xf32>,
    %36 = arith.mulf %1, %13 : vector<4x128xf32>
    %37 = arith.mulf %3, %15 : vector<4x128xf32>
    %38 = arith.subf %36, %37 : vector<4x128xf32>
    %39 = arith.mulf %5, %9 : vector<4x128xf32>
    %40 = arith.addf %38, %39 : vector<4x128xf32>
    %41 = arith.mulf %7, %11 : vector<4x128xf32>
    %42 = arith.addf %40, %41 : vector<4x128xf32>
    %c2_26 = arith.constant 2 : index
    %c0_27 = arith.constant 0 : index
    %c0_28 = arith.constant 0 : index
    %43 = vector.load %arg3[%c2_26, %c0_27, %c0_28] : memref<4x4x128xf32, #tpu.memory_space<vmem>>, vector<1x4x128xf32>
    %44 = vector.shape_cast %43 : vector<1x4x128xf32> to vector<4x128xf32>
    %45 = vector.shape_cast %42 : vector<4x128xf32> to vector<1x4x128xf32>
    tpu.vector_store %arg3[%c2_26, %c0_27, %c0_28], %45 {strides = array<i32>} : memref<4x4x128xf32, #tpu.memory_space<vmem>>, vector<1x4x128xf32>,
    %46 = arith.mulf %1, %15 : vector<4x128xf32>
    %47 = arith.mulf %3, %13 : vector<4x128xf32>
    %48 = arith.addf %46, %47 : vector<4x128xf32>
    %49 = arith.mulf %5, %11 : vector<4x128xf32>
    %50 = arith.subf %48, %49 : vector<4x128xf32>
    %51 = arith.mulf %7, %9 : vector<4x128xf32>
    %52 = arith.addf %50, %51 : vector<4x128xf32>
    %c3_29 = arith.constant 3 : index
    %c0_30 = arith.constant 0 : index
    %c0_31 = arith.constant 0 : index
    %53 = vector.load %arg3[%c3_29, %c0_30, %c0_31] : memref<4x4x128xf32, #tpu.memory_space<vmem>>, vector<1x4x128xf32>
    %54 = vector.shape_cast %53 : vector<1x4x128xf32> to vector<4x128xf32>
    %55 = vector.shape_cast %52 : vector<4x128xf32> to vector<1x4x128xf32>
    tpu.vector_store %arg3[%c3_29, %c0_30, %c0_31], %55 {strides = array<i32>} : memref<4x4x128xf32, #tpu.memory_space<vmem>>, vector<1x4x128xf32>,
    return
  }
  func.func @transform_0(%arg0: i32) -> (i32, i32, i32) {
    %c0_i32 = arith.constant 0 : i32
    %c0_i32_0 = arith.constant 0 : i32
    %c0_i32_1 = arith.constant 0 : i32
    return %c0_i32, %arg0, %c0_i32_0 : i32, i32, i32
  }
  func.func @transform_1(%arg0: i32) -> (i32, i32, i32) {
    %c0_i32 = arith.constant 0 : i32
    %c0_i32_0 = arith.constant 0 : i32
    %c0_i32_1 = arith.constant 0 : i32
    return %c0_i32, %arg0, %c0_i32_0 : i32, i32, i32
  }
  func.func @transform_2(%arg0: i32) -> (i32, i32, i32) {
    %c0_i32 = arith.constant 0 : i32
    %c0_i32_0 = arith.constant 0 : i32
    %c0_i32_1 = arith.constant 0 : i32
    return %c0_i32, %arg0, %c0_i32_0 : i32, i32, i32
  }
}

</mosaic_0001>

<bundles_post_ra>
// kernel: tpu_custom_call.1
= control target key start
LH: loop header
LB: loop body
LE: loop exit
PB: predicated region body
PF: predicated region fallthrough
CT: control target
= control target key end

     0   :  { %7 = vsyncpa [#allocation3], 0  ;;  %s249_s0 = inlined_call_operand.hbm [shape: f32[4,4,128], index: 0, kind: input, shape index: {}]   ;;  %s250_s1 = inlined_call_operand.hbm [shape: f32[4,4,128], index: 1, kind: input, shape index: {}]   ;;  %s251_s2 = inlined_call_operand.hbm [shape: f32[4,4,128], index: 2, kind: output, shape index: {}]  }
   0x1   :  { %8 = vsyncpa [#allocation6], 0 }
   0x2   :  { %9 = vsyncpa [#allocation4], 0  ;;  %s184_s9 = smov [#allocation2]   ;;  %s112_s13 = scalar_lea.hbm %s249_s0, 256 }
   0x3   :  { %s15_s10 = sshll.u32 %s184_s9, 4  ;;  %p113_p0 = scmp.ne.s32.totalorder %s249_s0, %s112_s13  ;;  %s16_s10 = int_to_ptr.vmem [resolvable:$true] %s15_s10 }
   0x4   :  { %p116_p1 = scmp.lt.u32.totalorder %s112_s13, %s249_s0 }
   0x6   :  { %p118_p2 = pnand %p116_p1, %p113_p0 }
   0x8   :  { %121 = shalt.err (!%p118_p2)
}
   0x9   :  { %s122_s18 = scalar_lea.vmem %s16_s10, 256  ;;  %p127_p4 = scmp.lt.s32.totalorder %s16_s10, %s16_s10 }
   0xa   :  { %p123_p3 = scmp.ne.s32.totalorder %s16_s10, %s122_s18  ;;  %p128_p5 = scmp.lt.s32.totalorder %s122_s18, %s122_s18 }
   0xc   :  { %p129_p6 = por %p128_p5, %p127_p4 }
   0xe   :  { %p130_p7 = pnand %p129_p6, %p123_p3 }
  0x10   :  { %133 = shalt.err (!%p130_p7)
}
  0x11   :  { %s185_s19 = smov 64   ;;  %s186_s20 = smov 4  }
  0x12   :  { %21 = dma.hbm_to_vmem [thread:$0]  %s249_s0, 256, %s16_s10, [#allocation3], %s185_s19, %s185_s19, %s186_s20  }
  0x13   :  { %s187_s23 = smov [#allocation5]   ;;  %s134_s27 = scalar_lea.hbm %s250_s1, 256 }
  0x14   :  { %s27_s24 = sshll.u32 %s187_s23, 4  ;;  %p135_p8 = scmp.ne.s32.totalorder %s250_s1, %s134_s27  ;;  %s28_s24 = int_to_ptr.vmem [resolvable:$true] %s27_s24 }
  0x15   :  { %p138_p9 = scmp.lt.u32.totalorder %s134_s27, %s250_s1 }
  0x17   :  { %p140_p10 = pnand %p138_p9, %p135_p8 }
  0x19   :  { %143 = shalt.err (!%p140_p10)
}
  0x1a   :  { %s144_s4 = scalar_lea.vmem %s28_s24, 256  ;;  %p149_p12 = scmp.lt.s32.totalorder %s28_s24, %s28_s24 }
  0x1b   :  { %p145_p11 = scmp.ne.s32.totalorder %s28_s24, %s144_s4  ;;  %p150_p13 = scmp.lt.s32.totalorder %s144_s4, %s144_s4 }
  0x1d   :  { %p151_p0 = por %p150_p13, %p149_p12 }
  0x1f   :  { %p152_p1 = pnand %p151_p0, %p145_p11 }
  0x21   :  { %155 = shalt.err (!%p152_p1)
}
  0x22   :  { %33 = dma.hbm_to_vmem [thread:$0]  %s250_s1, 256, %s28_s24, [#allocation6], %s185_s19, %s185_s19, %s186_s20  }
  0x23   :  { %178 = dma.done.wait [#allocation3], 256  }
  0x24   :  { %179 = vsyncadd [#allocation3], 4294967040 }
  0x25   :  { %180 = dma.done.wait [#allocation6], 256  }
  0x26   :  { %181 = vsyncadd [#allocation6], 4294967040  ;;  %v40_v0 = vld [vmem:[#allocation2] sm:$0xf]  ;;  %v42_v1 = vld [vmem:[#allocation2 + $0x4] sm:$0xf] }
  0x27   :  { %v44_v2 = vld [vmem:[#allocation2 + $0x8] sm:$0xf]  ;;  %v46_v3 = vld [vmem:[#allocation2 + $0xc] sm:$0xf]  ;;  %v47_v4 = vld [vmem:[#allocation5] sm:$0xf] }
  0x28   :  { %v49_v5 = vld [vmem:[#allocation5 + $0x4] sm:$0xf]  ;;  %v51_v6 = vld [vmem:[#allocation5 + $0x8] sm:$0xf]  ;;  %v53_v7 = vld [vmem:[#allocation5 + $0xc] sm:$0xf]  ;;  %v54_v8 = vmul.f32 %v47_v4, %v40_v0  ;;  %v63_v11 = vmul.f32 %v47_v4, %v42_v1  ;;  %v74_v20 = vmul.f32 %v47_v4, %v44_v2  ;;  %v85_v29 = vmul.f32 %v47_v4, %v46_v3 }
  0x29   :  { %v55_v9 = vmul.f32 %v49_v5, %v42_v1  ;;  %v62_v10 = vmul.f32 %v49_v5, %v40_v0  ;;  %v57_v12 = vmul.f32 %v51_v6, %v44_v2  ;;  %v59_v13 = vmul.f32 %v53_v7, %v46_v3  ;;  %s188_s1 = smov [#allocation7]  }
  0x2a   :  { %v65_v14 = vmul.f32 %v53_v7, %v44_v2  ;;  %v67_v15 = vmul.f32 %v51_v6, %v46_v3  ;;  %v71_v18 = vmul.f32 %v51_v6, %v40_v0  ;;  %v72_v19 = vmul.f32 %v53_v7, %v42_v1  ;;  %s94_s6 = sshll.u32 %s188_s1, 4  ;;  %s95_s6 = int_to_ptr.vmem [resolvable:$true] %s94_s6 }
  0x2b   :  { %v56_v16 = vsub.f32 %v54_v8, %v55_v9  ;;  %v64_v17 = vadd.f32 %v63_v11, %v62_v10  ;;  %v76_v21 = vmul.f32 %v49_v5, %v46_v3  ;;  %v80_v22 = vmul.f32 %v53_v7, %v40_v0  ;;  %s156_s7 = scalar_lea.vmem %s95_s6, 256  ;;  %p161_p3 = scmp.lt.s32.totalorder %s95_s6, %s95_s6 }
  0x2c   :  { %v81_v23 = vmul.f32 %v51_v6, %v42_v1  ;;  %v73_v26 = vsub.f32 %v71_v18, %v72_v19  ;;  %v83_v27 = vmul.f32 %v49_v5, %v44_v2  ;;  %p157_p2 = scmp.ne.s32.totalorder %s95_s6, %s156_s7  ;;  %p162_p4 = scmp.lt.s32.totalorder %s156_s7, %s156_s7 }
  0x2d   :  { %v58_v24 = vsub.f32 %v56_v16, %v57_v12  ;;  %v66_v25 = vadd.f32 %v65_v14, %v64_v17 }
  0x2e   :  { %v82_v28 = vadd.f32 %v81_v23, %v80_v22  ;;  %v75_v32 = vadd.f32 %v74_v20, %v73_v26  ;;  %p163_p5 = por %p162_p4, %p161_p3 }
  0x2f   :  { %v60_v30 = vsub.f32 %v58_v24, %v59_v13  ;;  %v68_v31 = vsub.f32 %v66_v25, %v67_v15 }
  0x30   :  { %v84_v33 = vsub.f32 %v82_v28, %v83_v27  ;;  %v77_v34 = vadd.f32 %v76_v21, %v75_v32  ;;  %p164_p6 = pnand %p163_p5, %p157_p2 }
  0x31   :  { %61 = vst [vmem:[#allocation7] sm:$0xf] %v60_v30  ;;  %70 = vst [vmem:[#allocation7 + $0x4] sm:$0xf] %v68_v31 }
  0x32   :  { %v86_v35 = vadd.f32 %v85_v29, %v84_v33  ;;  %79 = vst [vmem:[#allocation7 + $0x8] sm:$0xf] %v77_v34 }
  0x34   :  { %88 = vst [vmem:[#allocation7 + $0xc] sm:$0xf] %v86_v35 }
  0x35   :  { %167 = shalt.err (!%p164_p6)
}
  0x36   :  { %s168_s10 = scalar_lea.hbm %s251_s2, 256 }
  0x37   :  { %p169_p7 = scmp.ne.s32.totalorder %s251_s2, %s168_s10  ;;  %p172_p8 = scmp.lt.u32.totalorder %s168_s10, %s251_s2 }
  0x39   :  { %p174_p9 = pnand %p172_p8, %p169_p7 }
  0x3b   :  { %177 = shalt.err (!%p174_p9)
}
  0x3c   :  { %100 = dma.vmem_to_hbm [thread:$0]  %s95_s6, 256, %s251_s2, [#allocation4], %s185_s19, %s185_s19, %s186_s20  }
  0x3d   :  { %182 = dma.done.wait [#allocation4], 256  }
  0x3e   :  { %183 = vsyncadd [#allocation4], 4294967040 }
  0x3f   :  { %104 = vsyncpa [#allocation3], 1 }
  0x40   :  { %105 = vsyncpa [#allocation6], 1 }
  0x41   :  { %106 = vsyncpa [#allocation4], 1 }

</bundles_post_ra>
